<compile_context>
chip_gen: v7x
topology: tpu7x:2x2x1
jax: 0.10.0
libtpu: 0.0.40
codegen_flags: <defaults>
</compile_context>

<pallas_src>
import functools

import jax
import jax.numpy as jnp
from jax.experimental import pallas as pl
from jax.experimental.pallas import tpu as pltpu


# ----- model configuration (mirrors the PyTorch module) ---------------------
INPUT_DIM = 16
LATENT_DIM = 8
COND_DIM = 4
HIDDEN = (32, 16)

LANES = 128  # TPU vreg lane width; slab last dim


def _round_up(n, m):
    return (n + m - 1) // m * m


# ----- packed parameter slab layout -----------------------------------------
def _make_layout():
    """Row offsets for every weight/bias block inside the [rows, 128] slab.

    Each block starts on an 8-row (sublane) boundary. Weights are stored
    transposed ([in_features, out_features]) so the kernel computes x @ W.
    """
    h1, h2 = HIDDEN
    rows = {}
    r = 0

    def add(name, nrows):
        nonlocal r
        rows[name] = r
        r = _round_up(r + nrows, 8)

    add("enc1_w", INPUT_DIM + COND_DIM)   # [in+cond, h1]   (x rows, then c rows)
    add("enc2_w", h1)                     # [h1, h2]
    add("head_w", h2)                     # [h2, 2*latent]  (mu | logvar fused)
    add("dec1_w", LATENT_DIM + COND_DIM)  # [latent+cond, h2] (z rows, then c rows)
    add("dec2_w", h2)                     # [h2, h1]
    add("out_w", h1)                      # [h1, input]
    for b in ("enc1_b", "enc2_b", "head_b", "dec1_b", "dec2_b", "out_b"):
        add(b, 1)
    return rows, r


_ROWS, _SLAB_ROWS = _make_layout()
OUT_WIDTH = INPUT_DIM + 2 * LATENT_DIM  # packed output: [recon | mu | logvar]


# ----- kernel ----------------------------------------------------------------
def cvae_kernel(x_ref, c_ref, eps_ref, ws_ref, out_ref):
    h1, h2 = HIDDEN

    def w(name, nrows, ncols, row_off=0):
        r0 = _ROWS[name] + row_off
        return ws_ref[r0:r0 + nrows, 0:ncols]

    def b(name, ncols):
        r0 = _ROWS[name]
        return ws_ref[r0:r0 + 1, 0:ncols]

    dot = lambda a, bb: jnp.dot(a, bb, preferred_element_type=jnp.float32)
    relu = lambda v: jnp.maximum(v, 0.0)

    x = x_ref[...]
    c = c_ref[...]
    eps = eps_ref[...]

    # ---- encoder:  cat(x, c) @ W == x @ Wx + c @ Wc  (no lane shuffle) ----
    h = dot(x, w("enc1_w", INPUT_DIM, h1)) \
        + dot(c, w("enc1_w", COND_DIM, h1, row_off=INPUT_DIM)) \
        + b("enc1_b", h1)
    h = relu(h)
    h = relu(dot(h, w("enc2_w", h1, h2)) + b("enc2_b", h2))

    # ---- fused mu/logvar head: one matmul producing [TB, 2*latent] ----
    mulv = dot(h, w("head_w", h2, 2 * LATENT_DIM)) + b("head_b", 2 * LATENT_DIM)
    mu = mulv[:, :LATENT_DIM]
    lv = mulv[:, LATENT_DIM:]

    # ---- reparameterize:  z = mu + eps * exp(0.5 * logvar) ----
    z = mu + eps * jnp.exp(0.5 * lv)

    # ---- decoder ----
    d = dot(z, w("dec1_w", LATENT_DIM, h2)) \
        + dot(c, w("dec1_w", COND_DIM, h2, row_off=LATENT_DIM)) \
        + b("dec1_b", h2)
    d = relu(d)
    d = relu(dot(d, w("dec2_w", h2, h1)) + b("dec2_b", h1))
    recon = dot(d, w("out_w", h1, INPUT_DIM)) + b("out_b", INPUT_DIM)

    # ---- packed lane-dense output: one writeback DMA for all three results ----
    out_ref[:, 0:INPUT_DIM] = recon.astype(out_ref.dtype)
    out_ref[:, INPUT_DIM:INPUT_DIM + 2 * LATENT_DIM] = mulv.astype(out_ref.dtype)


# ----- wrapper ----------------------------------------------------------------
@functools.partial(jax.jit, static_argnames=("tb",))
def cvae_forward(x, c, eps, params_slab, *, tb=256):
    """Fused CVAE forward.

    x:           [N, INPUT_DIM]  f32
    c:           [N, COND_DIM]   f32
    eps:         [N, LATENT_DIM] f32 (standard-normal noise for reparameterize)
    params_slab: [_SLAB_ROWS, 128] f32 packed weights/biases (see pack_params)
    Returns (recon [N, INPUT_DIM], mu [N, LATENT_DIM], logvar [N, LATENT_DIM]).
    """
    N = x.shape[0]
    TB = _round_up(min(tb, N), 8)          # batch tile (rows per grid step)
    Np = _round_up(N, TB)
    if Np != N:
        pad = Np - N
        x = jnp.pad(x, ((0, pad), (0, 0)))
        c = jnp.pad(c, ((0, pad), (0, 0)))
        eps = jnp.pad(eps, ((0, pad), (0, 0)))

    grid = (Np // TB,)

    packed = pl.pallas_call(
        cvae_kernel,
        out_shape=jax.ShapeDtypeStruct((Np, OUT_WIDTH), jnp.float32),
        grid_spec=pltpu.PrefetchScalarGridSpec(
            num_scalar_prefetch=0,
            grid=grid,
            in_specs=[
                pl.BlockSpec((TB, INPUT_DIM), lambda i: (i, 0)),
                pl.BlockSpec((TB, COND_DIM), lambda i: (i, 0)),
                pl.BlockSpec((TB, LATENT_DIM), lambda i: (i, 0)),
                # Whole weight slab, constant block index -> resident in VMEM
                # across grid steps (no re-DMA).
                pl.BlockSpec(params_slab.shape, lambda i: (0, 0)),
            ],
            out_specs=pl.BlockSpec((TB, OUT_WIDTH), lambda i: (i, 0)),
        ),
        compiler_params=pltpu.CompilerParams(
            dimension_semantics=("parallel",)),
    )(x, c, eps, params_slab)

    recon = packed[:N, 0:INPUT_DIM]
    mu = packed[:N, INPUT_DIM:INPUT_DIM + LATENT_DIM]
    logvar = packed[:N, INPUT_DIM + LATENT_DIM:OUT_WIDTH]
    return recon, mu, logvar


# ----- parameter init (nn.Linear-style) and slab packing ----------------------
def init_params(key):
    """PyTorch-like params: W stored transposed [in, out], b [out]."""
    h1, h2 = HIDDEN

    def linear(k, fan_in, fan_out):
        kw, kb = jax.random.split(k)
        bound = 1.0 / jnp.sqrt(fan_in)
        w = jax.random.uniform(kw, (fan_in, fan_out), jnp.float32, -bound, bound)
        b = jax.random.uniform(kb, (fan_out,), jnp.float32, -bound, bound)
        return w, b

    ks = jax.random.split(key, 7)
    p = {}
    p["enc1_w"], p["enc1_b"] = linear(ks[0], INPUT_DIM + COND_DIM, h1)
    p["enc2_w"], p["enc2_b"] = linear(ks[1], h1, h2)
    p["mu_w"], p["mu_b"] = linear(ks[2], h2, LATENT_DIM)
    p["lv_w"], p["lv_b"] = linear(ks[3], h2, LATENT_DIM)
    p["dec1_w"], p["dec1_b"] = linear(ks[4], LATENT_DIM + COND_DIM, h2)
    p["dec2_w"], p["dec2_b"] = linear(ks[5], h2, h1)
    p["out_w"], p["out_b"] = linear(ks[6], h1, INPUT_DIM)
    return p


def pack_params(p):
    """Pack all weights/biases into one [_SLAB_ROWS, 128] f32 slab."""
    slab = jnp.zeros((_SLAB_ROWS, LANES), jnp.float32)

    def put_w(s, name, w):
        r0 = _ROWS[name]
        return s.at[r0:r0 + w.shape[0], :w.shape[1]].set(w)

    def put_b(s, name, b):
        r0 = _ROWS[name]
        return s.at[r0, :b.shape[0]].set(b)

    head_w = jnp.concatenate([p["mu_w"], p["lv_w"]], axis=1)
    head_b = jnp.concatenate([p["mu_b"], p["lv_b"]], axis=0)

    slab = put_w(slab, "enc1_w", p["enc1_w"])
    slab = put_w(slab, "enc2_w", p["enc2_w"])
    slab = put_w(slab, "head_w", head_w)
    slab = put_w(slab, "dec1_w", p["dec1_w"])
    slab = put_w(slab, "dec2_w", p["dec2_w"])
    slab = put_w(slab, "out_w", p["out_w"])
    slab = put_b(slab, "enc1_b", p["enc1_b"])
    slab = put_b(slab, "enc2_b", p["enc2_b"])
    slab = put_b(slab, "head_b", head_b)
    slab = put_b(slab, "dec1_b", p["dec1_b"])
    slab = put_b(slab, "dec2_b", p["dec2_b"])
    slab = put_b(slab, "out_b", p["out_b"])
    return slab


# ----- plain-JAX reference (mirrors the PyTorch forward) ----------------------
def cvae_forward_ref(x, c, eps, p):
    relu = lambda v: jnp.maximum(v, 0.0)
    xc = jnp.concatenate([x, c], axis=1)
    h = relu(xc @ p["enc1_w"] + p["enc1_b"])
    h = relu(h @ p["enc2_w"] + p["enc2_b"])
    mu = h @ p["mu_w"] + p["mu_b"]
    lv = h @ p["lv_w"] + p["lv_b"]
    z = mu + eps * jnp.exp(0.5 * lv)
    zc = jnp.concatenate([z, c], axis=1)
    d = relu(zc @ p["dec1_w"] + p["dec1_b"])
    d = relu(d @ p["dec2_w"] + p["dec2_b"])
    recon = d @ p["out_w"] + p["out_b"]
    return recon, mu, lv


if __name__ == "__main__":
    batch = 200  # deliberately not a multiple of the tile to exercise padding

    root = jax.random.PRNGKey(0)
    k_x, k_c, k_eps, k_params = jax.random.split(root, 4)

    x = jax.random.normal(k_x, (batch, INPUT_DIM), jnp.float32)
    c = jax.random.normal(k_c, (batch, COND_DIM), jnp.float32)
    eps = jax.random.normal(k_eps, (batch, LATENT_DIM), jnp.float32)

    raw_params = init_params(k_params)
    slab = pack_params(raw_params)

    # TB=128 -> grid of 2 batch tiles (exercises pipelining + padding path).
    recon, mu, logvar = cvae_forward(x, c, eps, slab, tb=128)
    jax.block_until_ready((recon, mu, logvar))

    recon_r, mu_r, lv_r = cvae_forward_ref(x, c, eps, raw_params)
    assert jnp.allclose(recon, recon_r, atol=1e-5, rtol=1e-5)
    assert jnp.allclose(mu, mu_r, atol=1e-5, rtol=1e-5)
    assert jnp.allclose(logvar, lv_r, atol=1e-5, rtol=1e-5)

    print("KERNEL_OK")
</pallas_src>

<mosaic_0001>
module attributes {stable_mosaic.version = 11 : i64} {
  func.func @cvae_kernel(%arg0: i32, %arg1: memref<128x16xf32, #tpu.memory_space<vmem>>, %arg2: memref<128x4xf32, #tpu.memory_space<vmem>>, %arg3: memref<128x8xf32, #tpu.memory_space<vmem>>, %arg4: memref<184x128xf32, #tpu.memory_space<vmem>>, %arg5: memref<128x32xf32, #tpu.memory_space<vmem>>) attributes {dimension_semantics = [#tpu.dimension_semantics<parallel>], iteration_bounds = array<i64: 2>, scalar_prefetch = 0 : i64, scratch_operands = 0 : i64, tpu.core_type = #tpu.core_type<tc>, window_params = [{transform_indices = @transform_0, window_bounds = array<i64: 128, 16>}, {transform_indices = @transform_1, window_bounds = array<i64: 128, 4>}, {transform_indices = @transform_2, window_bounds = array<i64: 128, 8>}, {pipeline_mode = #tpu.pipeline_mode<synchronous>, transform_indices = @transform_3, window_bounds = array<i64: 184, 128>}, {transform_indices = @transform_4, window_bounds = array<i64: 128, 32>}]} {
    %c0 = arith.constant 0 : index
    %c0_0 = arith.constant 0 : index
    %0 = vector.load %arg1[%c0, %c0_0] : memref<128x16xf32, #tpu.memory_space<vmem>>, vector<128x16xf32>
    %c0_1 = arith.constant 0 : index
    %c0_2 = arith.constant 0 : index
    %1 = vector.load %arg2[%c0_1, %c0_2] : memref<128x4xf32, #tpu.memory_space<vmem>>, vector<128x4xf32>
    %c0_3 = arith.constant 0 : index
    %c0_4 = arith.constant 0 : index
    %2 = vector.load %arg3[%c0_3, %c0_4] : memref<128x8xf32, #tpu.memory_space<vmem>>, vector<128x8xf32>
    %c0_5 = arith.constant 0 : index
    %c0_6 = arith.constant 0 : index
    %3 = vector.load %arg4[%c0_5, %c0_6] : memref<184x128xf32, #tpu.memory_space<vmem>>, vector<16x32xf32>
    %cst = arith.constant dense<0.000000e+00> : vector<128x32xf32>
    %4 = tpu.matmul %0, %3, %cst {dimension_numbers = #tpu.dot_dimension_numbers<[1], [0], [0], [1], [0, 0, 1, 1], [], []>} : vector<128x16xf32>, vector<16x32xf32>, vector<128x32xf32> -> vector<128x32xf32>
    %c16 = arith.constant 16 : index
    %c0_7 = arith.constant 0 : index
    %5 = vector.load %arg4[%c16, %c0_7] : memref<184x128xf32, #tpu.memory_space<vmem>>, vector<4x32xf32>
    %cst_8 = arith.constant dense<0.000000e+00> : vector<128x32xf32>
    %6 = tpu.matmul %1, %5, %cst_8 {dimension_numbers = #tpu.dot_dimension_numbers<[1], [0], [0], [1], [0, 0, 1, 1], [], []>} : vector<128x4xf32>, vector<4x32xf32>, vector<128x32xf32> -> vector<128x32xf32>
    %7 = arith.addf %4, %6 : vector<128x32xf32>
    %c136 = arith.constant 136 : index
    %c0_9 = arith.constant 0 : index
    %8 = vector.load %arg4[%c136, %c0_9] : memref<184x128xf32, #tpu.memory_space<vmem>>, vector<1x32xf32>
    %9 = vector.broadcast %8 : vector<1x32xf32> to vector<128x32xf32>
    %10 = arith.addf %7, %9 : vector<128x32xf32>
    %cst_10 = arith.constant 0.000000e+00 : f32
    %11 = vector.broadcast %cst_10 : f32 to vector<128x32xf32>
    %12 = arith.maximumf %10, %11 : vector<128x32xf32>
    %c24 = arith.constant 24 : index
    %c0_11 = arith.constant 0 : index
    %13 = vector.load %arg4[%c24, %c0_11] : memref<184x128xf32, #tpu.memory_space<vmem>>, vector<32x16xf32>
    %cst_12 = arith.constant dense<0.000000e+00> : vector<128x16xf32>
    %14 = tpu.matmul %12, %13, %cst_12 {dimension_numbers = #tpu.dot_dimension_numbers<[1], [0], [0], [1], [0, 0, 1, 1], [], []>} : vector<128x32xf32>, vector<32x16xf32>, vector<128x16xf32> -> vector<128x16xf32>
    %c144 = arith.constant 144 : index
    %c0_13 = arith.constant 0 : index
    %15 = vector.load %arg4[%c144, %c0_13] : memref<184x128xf32, #tpu.memory_space<vmem>>, vector<1x16xf32>
    %16 = vector.broadcast %15 : vector<1x16xf32> to vector<128x16xf32>
    %17 = arith.addf %14, %16 : vector<128x16xf32>
    %cst_14 = arith.constant 0.000000e+00 : f32
    %18 = vector.broadcast %cst_14 : f32 to vector<128x16xf32>
    %19 = arith.maximumf %17, %18 : vector<128x16xf32>
    %c56 = arith.constant 56 : index
    %c0_15 = arith.constant 0 : index
    %20 = vector.load %arg4[%c56, %c0_15] : memref<184x128xf32, #tpu.memory_space<vmem>>, vector<16x16xf32>
    %cst_16 = arith.constant dense<0.000000e+00> : vector<128x16xf32>
    %21 = tpu.matmul %19, %20, %cst_16 {dimension_numbers = #tpu.dot_dimension_numbers<[1], [0], [0], [1], [0, 0, 1, 1], [], []>} : vector<128x16xf32>, vector<16x16xf32>, vector<128x16xf32> -> vector<128x16xf32>
    %c152 = arith.constant 152 : index
    %c0_17 = arith.constant 0 : index
    %22 = vector.load %arg4[%c152, %c0_17] : memref<184x128xf32, #tpu.memory_space<vmem>>, vector<1x16xf32>
    %23 = vector.broadcast %22 : vector<1x16xf32> to vector<128x16xf32>
    %24 = arith.addf %21, %23 : vector<128x16xf32>
    %25 = vector.extract_strided_slice %24 {offsets = [0, 0], sizes = [128, 8], strides = [1, 1]} : vector<128x16xf32> to vector<128x8xf32>
    %26 = vector.extract_strided_slice %24 {offsets = [0, 8], sizes = [128, 8], strides = [1, 1]} : vector<128x16xf32> to vector<128x8xf32>
    %cst_18 = arith.constant 5.000000e-01 : f32
    %27 = vector.broadcast %cst_18 : f32 to vector<128x8xf32>
    %28 = arith.mulf %27, %26 : vector<128x8xf32>
    %29 = math.exp %28 : vector<128x8xf32>
    %30 = arith.mulf %2, %29 : vector<128x8xf32>
    %31 = arith.addf %25, %30 : vector<128x8xf32>
    %c72 = arith.constant 72 : index
    %c0_19 = arith.constant 0 : index
    %32 = vector.load %arg4[%c72, %c0_19] : memref<184x128xf32, #tpu.memory_space<vmem>>, vector<8x16xf32>
    %cst_20 = arith.constant dense<0.000000e+00> : vector<128x16xf32>
    %33 = tpu.matmul %31, %32, %cst_20 {dimension_numbers = #tpu.dot_dimension_numbers<[1], [0], [0], [1], [0, 0, 1, 1], [], []>} : vector<128x8xf32>, vector<8x16xf32>, vector<128x16xf32> -> vector<128x16xf32>
    %c80 = arith.constant 80 : index
    %c0_21 = arith.constant 0 : index
    %34 = vector.load %arg4[%c80, %c0_21] : memref<184x128xf32, #tpu.memory_space<vmem>>, vector<4x16xf32>
    %cst_22 = arith.constant dense<0.000000e+00> : vector<128x16xf32>
    %35 = tpu.matmul %1, %34, %cst_22 {dimension_numbers = #tpu.dot_dimension_numbers<[1], [0], [0], [1], [0, 0, 1, 1], [], []>} : vector<128x4xf32>, vector<4x16xf32>, vector<128x16xf32> -> vector<128x16xf32>
    %36 = arith.addf %33, %35 : vector<128x16xf32>
    %c160 = arith.constant 160 : index
    %c0_23 = arith.constant 0 : index
    %37 = vector.load %arg4[%c160, %c0_23] : memref<184x128xf32, #tpu.memory_space<vmem>>, vector<1x16xf32>
    %38 = vector.broadcast %37 : vector<1x16xf32> to vector<128x16xf32>
    %39 = arith.addf %36, %38 : vector<128x16xf32>
    %cst_24 = arith.constant 0.000000e+00 : f32
    %40 = vector.broadcast %cst_24 : f32 to vector<128x16xf32>
    %41 = arith.maximumf %39, %40 : vector<128x16xf32>
    %c88 = arith.constant 88 : index
    %c0_25 = arith.constant 0 : index
    %42 = vector.load %arg4[%c88, %c0_25] : memref<184x128xf32, #tpu.memory_space<vmem>>, vector<16x32xf32>
    %cst_26 = arith.constant dense<0.000000e+00> : vector<128x32xf32>
    %43 = tpu.matmul %41, %42, %cst_26 {dimension_numbers = #tpu.dot_dimension_numbers<[1], [0], [0], [1], [0, 0, 1, 1], [], []>} : vector<128x16xf32>, vector<16x32xf32>, vector<128x32xf32> -> vector<128x32xf32>
    %c168 = arith.constant 168 : index
    %c0_27 = arith.constant 0 : index
    %44 = vector.load %arg4[%c168, %c0_27] : memref<184x128xf32, #tpu.memory_space<vmem>>, vector<1x32xf32>
    %45 = vector.broadcast %44 : vector<1x32xf32> to vector<128x32xf32>
    %46 = arith.addf %43, %45 : vector<128x32xf32>
    %cst_28 = arith.constant 0.000000e+00 : f32
    %47 = vector.broadcast %cst_28 : f32 to vector<128x32xf32>
    %48 = arith.maximumf %46, %47 : vector<128x32xf32>
    %c104 = arith.constant 104 : index
    %c0_29 = arith.constant 0 : index
    %49 = vector.load %arg4[%c104, %c0_29] : memref<184x128xf32, #tpu.memory_space<vmem>>, vector<32x16xf32>
    %cst_30 = arith.constant dense<0.000000e+00> : vector<128x16xf32>
    %50 = tpu.matmul %48, %49, %cst_30 {dimension_numbers = #tpu.dot_dimension_numbers<[1], [0], [0], [1], [0, 0, 1, 1], [], []>} : vector<128x32xf32>, vector<32x16xf32>, vector<128x16xf32> -> vector<128x16xf32>
    %c176 = arith.constant 176 : index
    %c0_31 = arith.constant 0 : index
    %51 = vector.load %arg4[%c176, %c0_31] : memref<184x128xf32, #tpu.memory_space<vmem>>, vector<1x16xf32>
    %52 = vector.broadcast %51 : vector<1x16xf32> to vector<128x16xf32>
    %53 = arith.addf %50, %52 : vector<128x16xf32>
    %c0_32 = arith.constant 0 : index
    %c0_33 = arith.constant 0 : index
    %54 = vector.load %arg5[%c0_32, %c0_33] : memref<128x32xf32, #tpu.memory_space<vmem>>, vector<128x16xf32>
    tpu.vector_store %arg5[%c0_32, %c0_33], %53 {strides = array<i32>} : memref<128x32xf32, #tpu.memory_space<vmem>>, vector<128x16xf32>,
    %c0_34 = arith.constant 0 : index
    %c16_35 = arith.constant 16 : index
    %55 = vector.load %arg5[%c0_34, %c16_35] : memref<128x32xf32, #tpu.memory_space<vmem>>, vector<128x16xf32>
    tpu.vector_store %arg5[%c0_34, %c16_35], %24 {strides = array<i32>} : memref<128x32xf32, #tpu.memory_space<vmem>>, vector<128x16xf32>,
    return
  }
  func.func @transform_0(%arg0: i32) -> (i32, i32) {
    %c0_i32 = arith.constant 0 : i32
    %c0_i32_0 = arith.constant 0 : i32
    return %arg0, %c0_i32 : i32, i32
  }
  func.func @transform_1(%arg0: i32) -> (i32, i32) {
    %c0_i32 = arith.constant 0 : i32
    %c0_i32_0 = arith.constant 0 : i32
    return %arg0, %c0_i32 : i32, i32
  }
  func.func @transform_2(%arg0: i32) -> (i32, i32) {
    %c0_i32 = arith.constant 0 : i32
    %c0_i32_0 = arith.constant 0 : i32
    return %arg0, %c0_i32 : i32, i32
  }
  func.func @transform_3(%arg0: i32) -> (i32, i32) {
    %c0_i32 = arith.constant 0 : i32
    %c0_i32_0 = arith.constant 0 : i32
    %c0_i32_1 = arith.constant 0 : i32
    return %c0_i32, %c0_i32_0 : i32, i32
  }
  func.func @transform_4(%arg0: i32) -> (i32, i32) {
    %c0_i32 = arith.constant 0 : i32
    %c0_i32_0 = arith.constant 0 : i32
    return %arg0, %c0_i32 : i32, i32
  }
}

</mosaic_0001>

<bundles_post_ra>
// kernel: cvae_forward.1
= control target key start
LH: loop header
LB: loop body
LE: loop exit
PB: predicated region body
PF: predicated region fallthrough
CT: control target
= control target key end

     0   :  { %s2923_s15 = smov 0   ;;  %s3487_s0 = inlined_call_operand.vmem [shape: f32[256,16], index: 0, kind: input, shape index: {}]   ;;  %s3488_s1 = inlined_call_operand.vmem [shape: f32[256,4], index: 1, kind: input, shape index: {}]   ;;  %s3489_s2 = inlined_call_operand.vmem [shape: f32[256,8], index: 2, kind: input, shape index: {}]   ;;  %s3490_s3 = inlined_call_operand.vmem [shape: f32[184,128], index: 3, kind: input, shape index: {}]   ;;  %s3491_s4 = inlined_call_operand.vmem [shape: f32[256,32], index: 4, kind: output, shape index: {}]  }
   0x1 LB: > { %s2264_s16 = sadd.s32 4294967295, %s2894_s15   ;;  %p2268_p0 = scmp.ge.s32.totalorder %s2894_s15, 1  ;;  %s2894_s15 = sphi %s2923_s15, %s14_s15  }
   0x2   : > { %p185_p1 = scmp.lt.s32.totalorder %s2894_s15, 3 }
   0x4   : > { %p186_p2 = pnand %p2268_p0, %p185_p1 }
   0x5   : > { %v295_v0 = vld [vmem:[%s3490_s3 + $0x10] sm:$0xf] (!%p186_p2)  ;;  %vm345_vm0 = vcmask (!%p186_p2), 1043456   ;;  %s2269_s19 = sshll.u32 (!%p186_p2), %s2264_s16, 4  ;;  %v293_v1 = vld [vmem:[%s3490_s3] sm:$0xff] (!%p186_p2)  ;;  %v294_v2 = vld [vmem:[%s3490_s3 + $0x8] sm:$0xff] (!%p186_p2) }
   0x6   : > { %189 = sbr.rel (%p186_p2) target bundleno = 1521 (0x5f1), region = 36  ;;  %2560 = vmatprep.subr.msk.mxu0 (!%p186_p2), %vm345_vm0, %v295_v0  ;;  %p222_p3 = scmp.lt.s32.totalorder (!%p186_p2), %s2269_s19, 31  ;;  %v725_v3 = vld [vmem:[%s3490_s3 + $0x18] sm:$0xff] (!%p186_p2)  ;;  %v726_v4 = vld [vmem:[%s3490_s3 + $0x20] sm:$0xff] (!%p186_p2)  ;;  %v2786_v5 = vpack.c.bf16 (!%p186_p2), %v294_v2, %v293_v1  ;;  %vm296_vm1 = vcmask (!%p186_p2), 31744   ;;  %vm494_vm2 = vcmask (!%p186_p2), 130048  }
   0x7   : > { %2561 = vmatpush3.msk.msra.mxu0 (!%p186_p2), %vm345_vm0, %v295_v0  ;;  %v2790_v6 = vpack.c.bf16 (!%p186_p2), %v726_v4, %v725_v3  ;;  %v727_v39 = vld [vmem:[%s3490_s3 + $0x28] sm:$0xff] (!%p186_p2)  ;;  %v728_v40 = vld [vmem:[%s3490_s3 + $0x30] sm:$0xff] (!%p186_p2)  ;;  %v944_v42 = vld [vmem:[%s3490_s3 + $0x38] sm:$0xff] (!%p186_p2)  ;;  %vm734_vm3 = vcmask (!%p186_p2), 261120   ;;  %s2896_s29 = smov (!%p186_p2), 120   ;;  %s2897_s30 = smov (!%p186_p2), 16  }
   0x8   : > { %2787 = vmatprep.subr.bf16.mxu0 (!%p186_p2), %v2786_v5  ;;  %v2794_v41 = vpack.c.bf16 (!%p186_p2), %v728_v40, %v727_v39  ;;  %v945_v43 = vld [vmem:[%s3490_s3 + $0x40] sm:$0xff] (!%p186_p2)  ;;  %v2310_v45 = vld [vmem:[%s3490_s3 + $0x88] ss:$0 sm:$0xff] (!%p186_p2)  ;;  %vm1438_vm4 = vcmask (!%p186_p2), 64512   ;;  %vm2167_vm5 = vcmask (!%p186_p2), 261248  }
   0x9   : > { %2791 = vmatprep.subr.bf16.mxu1 (!%p186_p2), %v2790_v6  ;;  %v2798_v44 = vpack.c.bf16 (!%p186_p2), %v945_v43, %v944_v42 }
   0xa   : > { %2793 = vmatpush3.bf16.msra.mxu1 (!%p186_p2), %v2790_v6 }
   0xb   : > { %2795 = vmatprep.subr.bf16.mxu1 (!%p186_p2), %v2794_v41 }
   0xd   : > { %s3493_s19 = smov (!%p222_p3, %s2269_s19), 31 }
   0xe   : > { %s2948_s28 = sshll.u32 %s3493_s19, 3  ;;  %2797 = vmatpush3.bf16.msra.mxu1 %v2794_v41 }
   0xf   : > { %s2954_s5 = scalar_lea.vmem %s3488_s1, %s2948_s28  ;;  %s3031_s8 = scalar_lea.vmem %s3487_s0, %s2948_s28  ;;  %2799 = vmatprep.subr.bf16.mxu1 %v2798_v44 }
  0x10   : > { %v2957_v7 = vld [vmem:[%s2954_s5] sm:$0xff]  ;;  %v2960_v8 = vld [vmem:[%s2954_s5 + $0x8] sm:$0xff]  ;;  %v2963_v9 = vld [vmem:[%s2954_s5 + $0x10] sm:$0xff]  ;;  %s3275_s11 = scalar_lea.vmem %s3489_s2, %s2948_s28 }
  0x11   : > { %2562 = vmatprep.mubr.msk.f32.mxu0 %vm296_vm1, %v2957_v7  ;;  %v2972_v10 = vld [vmem:[%s2954_s5 + $0x18] sm:$0xff]  ;;  %v2975_v11 = vld [vmem:[%s2954_s5 + $0x20] sm:$0xff]  ;;  %v2982_v12 = vld [vmem:[%s2954_s5 + $0x28] sm:$0xff] }
  0x12   : > { %2563 = vmatmul.mubr.msk.f32.vlgmr.msra.gmra.mrb[0].mxu0 %vm296_vm1, %v2960_v8  ;;  %v2985_v13 = vld [vmem:[%s2954_s5 + $0x30] sm:$0xff]  ;;  %v2992_v14 = vld [vmem:[%s2954_s5 + $0x38] sm:$0xff]  ;;  %v2995_v15 = vld [vmem:[%s2954_s5 + $0x40] sm:$0xff] }
  0x13   : > { %2789 = vmatpush3.bf16.msra.mxu0 %v2786_v5  ;;  %2565 = vmatprep.mubr.msk.f32.mxu0 %vm296_vm1, %v2963_v9  ;;  %v3002_v16 = vld [vmem:[%s2954_s5 + $0x48] sm:$0xff]  ;;  %v3005_v17 = vld [vmem:[%s2954_s5 + $0x50] sm:$0xff]  ;;  %v3012_v18 = vld [vmem:[%s2954_s5 + $0x58] sm:$0xff] }
  0x14   : > { %v3015_v19 = vld [vmem:[%s2954_s5 + $0x60] sm:$0xff]  ;;  %v3022_v20 = vld [vmem:[%s2954_s5 + $0x68] sm:$0xff]  ;;  %v3025_v21 = vld [vmem:[%s2954_s5 + $0x70] sm:$0xff] }
  0x15   : > { %v3038_v22 = vld [vmem:[%s2954_s5 + $0x78] sm:$0xff]  ;;  %v245_v23 = vld [vmem:[%s3031_s8] sm:$0xff]  ;;  %v246_v24 = vld [vmem:[%s3031_s8 + $0x8] sm:$0xff] }
  0x16   : > { %2566 = vmatmul.mubr.msk.f32.gmra.mrb[2].mxu0 %vm296_vm1, %v2972_v10  ;;  %v247_v25 = vld [vmem:[%s3031_s8 + $0x10] sm:$0xff]  ;;  %v248_v26 = vld [vmem:[%s3031_s8 + $0x18] sm:$0xff]  ;;  %v249_v27 = vld [vmem:[%s3031_s8 + $0x20] sm:$0xff] }
  0x17   : > { %2568 = vmatprep.mubr.msk.f32.mxu0 %vm296_vm1, %v2975_v11  ;;  %v250_v28 = vld [vmem:[%s3031_s8 + $0x28] sm:$0xff]  ;;  %v251_v29 = vld [vmem:[%s3031_s8 + $0x30] sm:$0xff]  ;;  %v252_v30 = vld [vmem:[%s3031_s8 + $0x38] sm:$0xff] }
  0x18   : > { %v253_v31 = vld [vmem:[%s3031_s8 + $0x40] sm:$0xff]  ;;  %v254_v32 = vld [vmem:[%s3031_s8 + $0x48] sm:$0xff]  ;;  %v255_v33 = vld [vmem:[%s3031_s8 + $0x50] sm:$0xff] }
  0x19   : > { %v256_v34 = vld [vmem:[%s3031_s8 + $0x58] sm:$0xff]  ;;  %v257_v35 = vld [vmem:[%s3031_s8 + $0x60] sm:$0xff]  ;;  %v258_v36 = vld [vmem:[%s3031_s8 + $0x68] sm:$0xff] }
  0x1a   : > { %2569 = vmatmul.mubr.msk.f32.gmra.mrb[4].mxu0 %vm296_vm1, %v2982_v12  ;;  %v259_v37 = vld [vmem:[%s3031_s8 + $0x70] sm:$0xff]  ;;  %v260_v38 = vld [vmem:[%s3031_s8 + $0x78] sm:$0xff] }
  0x1b   : > { %2571 = vmatprep.mubr.msk.f32.mxu0 %vm296_vm1, %v2985_v13 }
  0x1e   : > { %2572 = vmatmul.mubr.msk.f32.gmra.mrb[6].mxu0 %vm296_vm1, %v2992_v14 }
  0x1f   : > { %2574 = vmatprep.mubr.msk.f32.mxu0 %vm296_vm1, %v2995_v15 }
  0x22   : > { %2575 = vmatmul.mubr.msk.f32.gmra.mrb[8].mxu0 %vm296_vm1, %v3002_v16 }
  0x23   : > { %2577 = vmatprep.mubr.msk.f32.mxu0 %vm296_vm1, %v3005_v17 }
  0x26   : > { %2578 = vmatmul.mubr.msk.f32.gmra.mrb[10].mxu0 %vm296_vm1, %v3012_v18 }
  0x27   : > { %2580 = vmatprep.mubr.msk.f32.mxu0 %vm296_vm1, %v3015_v19 }
  0x2a   : > { %2581 = vmatmul.mubr.msk.f32.gmra.mrb[12].mxu0 %vm296_vm1, %v3022_v20 }
  0x2b   : > { %2583 = vmatprep.mubr.msk.f32.mxu0 %vm296_vm1, %v3025_v21 }
  0x2e   : > { %2584 = vmatmul.mubr.msk.f32.gmra.mrb[14].mxu0 %vm296_vm1, %v3038_v22 }
  0x2f   : > { %2590 = vmatprep.mubr.msk.f32.mxu0 %vm494_vm2, %v245_v23 }
  0x32   : > { %2591 = vmatmul.mubr.msk.f32.vlgmr.msra.gmra.mrb[0].mxu0 %vm494_vm2, %v246_v24 }
  0x33   : > { %2593 = vmatprep.mubr.msk.f32.mxu0 %vm494_vm2, %v247_v25 }
  0x36   : > { %2594 = vmatmul.mubr.msk.f32.gmra.mrb[2].mxu0 %vm494_vm2, %v248_v26 }
  0x37   : > { %2596 = vmatprep.mubr.msk.f32.mxu0 %vm494_vm2, %v249_v27 }
  0x3a   : > { %2597 = vmatmul.mubr.msk.f32.gmra.mrb[4].mxu0 %vm494_vm2, %v250_v28 }
  0x3b   : > { %2599 = vmatprep.mubr.msk.f32.mxu0 %vm494_vm2, %v251_v29 }
  0x3e   : > { %2600 = vmatmul.mubr.msk.f32.gmra.mrb[6].mxu0 %vm494_vm2, %v252_v30 }
  0x3f   : > { %2602 = vmatprep.mubr.msk.f32.mxu0 %vm494_vm2, %v253_v31 }
  0x42   : > { %2603 = vmatmul.mubr.msk.f32.gmra.mrb[8].mxu0 %vm494_vm2, %v254_v32 }
  0x43   : > { %2605 = vmatprep.mubr.msk.f32.mxu0 %vm494_vm2, %v255_v33 }
  0x46   : > { %2606 = vmatmul.mubr.msk.f32.gmra.mrb[10].mxu0 %vm494_vm2, %v256_v34 }
  0x47   : > { %2608 = vmatprep.mubr.msk.f32.mxu0 %vm494_vm2, %v257_v35 }
  0x4a   : > { %2609 = vmatmul.mubr.msk.f32.gmra.mrb[12].mxu0 %vm494_vm2, %v258_v36 }
  0x4b   : > { %2611 = vmatprep.mubr.msk.f32.mxu0 %vm494_vm2, %v259_v37 }
  0x4e   : > { %2612 = vmatmul.mubr.msk.f32.gmra.mrb[14].mxu0 %vm494_vm2, %v260_v38 }
  0x4f   : > { %2676 = vmatprep.mubr.msk.f32.mxu0 %vm296_vm1, %v2957_v7 }
 0x105   : > { %v2592_v46 = vpop.f32.mrb[0].mxu0 }
 0x106   : > { %v694_v47 = vadd.f32 %v2592_v46, %v2310_v45  ;;  %v609_v48 = vpop.f32.mrb[1].mxu0  ;;  %v2311_v46 = vld [vmem:[%s3490_s3 + $0x90] ss:$0 sm:$0xff] }
 0x107   : > { %v693_v49 = vadd.f32 %v2310_v45, %v609_v48 }
 0x108   : > { %v710_v52 = vmax.f32 %v694_v47, 0.0 }
 0x109   : > { %v709_v50 = vmax.f32 %v693_v49, 0.0  ;;  %v2595_v51 = vpop.f32.mrb[2].mxu0 }
 0x10a   : > { %v696_v53 = vadd.f32 %v2595_v51, %v2310_v45  ;;  %v619_v54 = vpop.f32.mrb[3].mxu0 }
 0x10b   : > { %v695_v55 = vadd.f32 %v2310_v45, %v619_v54  ;;  %2622 = vmatprep.mubr.msk.f32.mxu1 %vm734_vm3, %v709_v50 }
 0x10c   : > { %2623 = vmatmul.mubr.msk.f32.vlgmr.msra.gmra.mrb[0].mxu1 %vm734_vm3, %v710_v52  ;;  %v712_v58 = vmax.f32 %v696_v53, 0.0 }
 0x10d   : > { %v711_v56 = vmax.f32 %v695_v55, 0.0  ;;  %v2598_v57 = vpop.f32.mrb[4].mxu0  ;;  %2801 = vmatpush3.bf16.msra.mxu1 %v2798_v44 }
 0x10e   : > { %v698_v59 = vadd.f32 %v2598_v57, %v2310_v45  ;;  %v629_v60 = vpop.f32.mrb[5].mxu0 }
 0x10f   : > { %v697_v61 = vadd.f32 %v2310_v45, %v629_v60  ;;  %2625 = vmatprep.mubr.msk.f32.mxu1 %vm734_vm3, %v711_v56 }
 0x110   : > { %2626 = vmatmul.mubr.msk.f32.gmra.mrb[2].mxu1 %vm734_vm3, %v712_v58  ;;  %v714_v0 = vmax.f32 %v698_v59, 0.0 }
 0x111   : > { %v713_v62 = vmax.f32 %v697_v61, 0.0  ;;  %v2601_v63 = vpop.f32.mrb[6].mxu0 }
 0x112   : > { %v700_v1 = vadd.f32 %v2601_v63, %v2310_v45  ;;  %v639_v2 = vpop.f32.mrb[7].mxu0 }
 0x113   : > { %v699_v3 = vadd.f32 %v2310_v45, %v639_v2  ;;  %2628 = vmatprep.mubr.msk.f32.mxu1 %vm734_vm3, %v713_v62 }
 0x114   : > { %2629 = vmatmul.mubr.msk.f32.gmra.mrb[4].mxu1 %vm734_vm3, %v714_v0  ;;  %v716_v6 = vmax.f32 %v700_v1, 0.0 }
 0x115   : > { %v715_v4 = vmax.f32 %v699_v3, 0.0  ;;  %v2604_v5 = vpop.f32.mrb[8].mxu0 }
 0x116   : > { %v702_v7 = vadd.f32 %v2604_v5, %v2310_v45  ;;  %v649_v23 = vpop.f32.mrb[9].mxu0 }
 0x117   : > { %v701_v24 = vadd.f32 %v2310_v45, %v649_v23  ;;  %2631 = vmatprep.mubr.msk.f32.mxu1 %vm734_vm3, %v715_v4 }
 0x118   : > { %2632 = vmatmul.mubr.msk.f32.gmra.mrb[6].mxu1 %vm734_vm3, %v716_v6  ;;  %v718_v27 = vmax.f32 %v702_v7, 0.0 }
 0x119   : > { %v717_v25 = vmax.f32 %v701_v24, 0.0  ;;  %v2607_v26 = vpop.f32.mrb[10].mxu0 }
 0x11a   : > { %v704_v28 = vadd.f32 %v2607_v26, %v2310_v45  ;;  %v659_v29 = vpop.f32.mrb[11].mxu0 }
 0x11b   : > { %v703_v30 = vadd.f32 %v2310_v45, %v659_v29  ;;  %2634 = vmatprep.mubr.msk.f32.mxu1 %vm734_vm3, %v717_v25 }
 0x11c   : > { %2635 = vmatmul.mubr.msk.f32.gmra.mrb[8].mxu1 %vm734_vm3, %v718_v27  ;;  %v720_v33 = vmax.f32 %v704_v28, 0.0 }
 0x11d   : > { %v719_v31 = vmax.f32 %v703_v30, 0.0  ;;  %v2610_v32 = vpop.f32.mrb[12].mxu0 }
 0x11e   : > { %v706_v34 = vadd.f32 %v2610_v32, %v2310_v45  ;;  %v669_v35 = vpop.f32.mrb[13].mxu0 }
 0x11f   : > { %v705_v36 = vadd.f32 %v2310_v45, %v669_v35  ;;  %2637 = vmatprep.mubr.msk.f32.mxu1 %vm734_vm3, %v719_v31 }
 0x120   : > { %2638 = vmatmul.mubr.msk.f32.gmra.mrb[10].mxu1 %vm734_vm3, %v720_v33  ;;  %v722_v39 = vmax.f32 %v706_v34, 0.0 }
 0x121   : > { %v721_v37 = vmax.f32 %v705_v36, 0.0  ;;  %v2613_v38 = vpop.f32.mrb[14].mxu0 }
 0x122   : > { %v708_v40 = vadd.f32 %v2613_v38, %v2310_v45  ;;  %v679_v41 = vpop.f32.mrb[15].mxu0 }
 0x123   : > { %v707_v42 = vadd.f32 %v2310_v45, %v679_v41  ;;  %2640 = vmatprep.mubr.msk.f32.mxu1 %vm734_vm3, %v721_v37 }
 0x124   : > { %2641 = vmatmul.mubr.msk.f32.gmra.mrb[12].mxu1 %vm734_vm3, %v722_v39  ;;  %v724_v44 = vmax.f32 %v708_v40, 0.0 }
 0x125   : > { %v723_v43 = vmax.f32 %v707_v42, 0.0 }
 0x127   : > { %2643 = vmatprep.mubr.msk.f32.mxu1 %vm734_vm3, %v723_v43 }
 0x128   : > { %2644 = vmatmul.mubr.msk.f32.gmra.mrb[14].mxu1 %vm734_vm3, %v724_v44 }
 0x1df   : > { %v2624_v47 = vpop.f32.mrb[0].mxu1 }
 0x1e0   : > { %v855_v48 = vadd.f32 %v2624_v47, %v2311_v46  ;;  %v849_v49 = vpop.f32.mrb[1].mxu1  ;;  %v1289_v47 = vld [vmem:[%s3490_s3 + $0x50] sm:$0xf] }
 0x1e1   : > { %v850_v50 = vadd.f32 %v2311_v46, %v849_v49  ;;  %2674 = vmatprep.subr.msk.mxu0 %vm345_vm0, %v1289_v47 }
 0x1e2   : > { %v929_v52 = vmax.f32 %v855_v48, 0.0  ;;  %2675 = vmatpush3.msk.msra.mxu0 %vm345_vm0, %v1289_v47 }
 0x1e3   : > { %v928_v51 = vmax.f32 %v850_v50, 0.0  ;;  %v2627_v45 = vpop.f32.mrb[2].mxu1  ;;  %2677 = vmatmul.mubr.msk.f32.vlgmr.msra.gmra.mrb[16].mxu0 %vm296_vm1, %v2960_v8  ;;  %v3167_v8 = vld [vmem:[%s3490_s3 + $0x98] ss:$0 sm:$0xff] }
 0x1e4   : > { %v865_v53 = vadd.f32 %v2627_v45, %v2311_v46  ;;  %v859_v54 = vpop.f32.mrb[3].mxu1  ;;  %2679 = vmatprep.mubr.msk.f32.mxu0 %vm296_vm1, %v2963_v9 }
 0x1e5   : > { %v860_v55 = vadd.f32 %v2311_v46, %v859_v54  ;;  %2650 = vmatprep.mubr.msk.f32.mxu1 %vm494_vm2, %v928_v51 }
 0x1e6   : > { %2651 = vmatmul.mubr.msk.f32.vlgmr.msra.gmra.mrb[16].mxu1 %vm494_vm2, %v929_v52  ;;  %v931_v58 = vmax.f32 %v865_v53, 0.0 }
 0x1e7   : > { %v930_v56 = vmax.f32 %v860_v55, 0.0  ;;  %v2630_v57 = vpop.f32.mrb[4].mxu1  ;;  %2680 = vmatmul.mubr.msk.f32.gmra.mrb[18].mxu0 %vm296_vm1, %v2972_v10 }
 0x1e8   : > { %v875_v59 = vadd.f32 %v2630_v57, %v2311_v46  ;;  %v869_v60 = vpop.f32.mrb[5].mxu1  ;;  %2682 = vmatprep.mubr.msk.f32.mxu0 %vm296_vm1, %v2975_v11 }
 0x1e9   : > { %v870_v61 = vadd.f32 %v2311_v46, %v869_v60  ;;  %2653 = vmatprep.mubr.msk.f32.mxu1 %vm494_vm2, %v930_v56 }
 0x1ea   : > { %2654 = vmatmul.mubr.msk.f32.gmra.mrb[18].mxu1 %vm494_vm2, %v931_v58  ;;  %v933_v0 = vmax.f32 %v875_v59, 0.0 }
 0x1eb   : > { %v932_v62 = vmax.f32 %v870_v61, 0.0  ;;  %v2633_v63 = vpop.f32.mrb[6].mxu1  ;;  %2683 = vmatmul.mubr.msk.f32.gmra.mrb[20].mxu0 %vm296_vm1, %v2982_v12 }
 0x1ec   : > { %v885_v1 = vadd.f32 %v2633_v63, %v2311_v46  ;;  %v879_v2 = vpop.f32.mrb[7].mxu1  ;;  %2685 = vmatprep.mubr.msk.f32.mxu0 %vm296_vm1, %v2985_v13 }
 0x1ed   : > { %v880_v3 = vadd.f32 %v2311_v46, %v879_v2  ;;  %2656 = vmatprep.mubr.msk.f32.mxu1 %vm494_vm2, %v932_v62 }
 0x1ee   : > { %2657 = vmatmul.mubr.msk.f32.gmra.mrb[20].mxu1 %vm494_vm2, %v933_v0  ;;  %v935_v6 = vmax.f32 %v885_v1, 0.0 }
 0x1ef   : > { %v934_v4 = vmax.f32 %v880_v3, 0.0  ;;  %v2636_v5 = vpop.f32.mrb[8].mxu1  ;;  %2686 = vmatmul.mubr.msk.f32.gmra.mrb[22].mxu0 %vm296_vm1, %v2992_v14 }
 0x1f0   : > { %v895_v7 = vadd.f32 %v2636_v5, %v2311_v46  ;;  %v889_v23 = vpop.f32.mrb[9].mxu1  ;;  %2688 = vmatprep.mubr.msk.f32.mxu0 %vm296_vm1, %v2995_v15 }
 0x1f1   : > { %v890_v24 = vadd.f32 %v2311_v46, %v889_v23  ;;  %2659 = vmatprep.mubr.msk.f32.mxu1 %vm494_vm2, %v934_v4 }
 0x1f2   : > { %2660 = vmatmul.mubr.msk.f32.gmra.mrb[22].mxu1 %vm494_vm2, %v935_v6  ;;  %v937_v27 = vmax.f32 %v895_v7, 0.0 }
 0x1f3   : > { %v936_v25 = vmax.f32 %v890_v24, 0.0  ;;  %v2639_v26 = vpop.f32.mrb[10].mxu1  ;;  %2689 = vmatmul.mubr.msk.f32.gmra.mrb[24].mxu0 %vm296_vm1, %v3002_v16 }
 0x1f4   : > { %v905_v28 = vadd.f32 %v2639_v26, %v2311_v46  ;;  %v899_v29 = vpop.f32.mrb[11].mxu1  ;;  %2691 = vmatprep.mubr.msk.f32.mxu0 %vm296_vm1, %v3005_v17 }
 0x1f5   : > { %v900_v30 = vadd.f32 %v2311_v46, %v899_v29  ;;  %2662 = vmatprep.mubr.msk.f32.mxu1 %vm494_vm2, %v936_v25 }
 0x1f6   : > { %2663 = vmatmul.mubr.msk.f32.gmra.mrb[24].mxu1 %vm494_vm2, %v937_v27  ;;  %v939_v33 = vmax.f32 %v905_v28, 0.0 }
 0x1f7   : > { %v938_v31 = vmax.f32 %v900_v30, 0.0  ;;  %v2642_v32 = vpop.f32.mrb[12].mxu1  ;;  %2692 = vmatmul.mubr.msk.f32.gmra.mrb[26].mxu0 %vm296_vm1, %v3012_v18 }
 0x1f8   : > { %v915_v34 = vadd.f32 %v2642_v32, %v2311_v46  ;;  %v909_v35 = vpop.f32.mrb[13].mxu1  ;;  %2694 = vmatprep.mubr.msk.f32.mxu0 %vm296_vm1, %v3015_v19 }
 0x1f9   : > { %v910_v36 = vadd.f32 %v2311_v46, %v909_v35  ;;  %2665 = vmatprep.mubr.msk.f32.mxu1 %vm494_vm2, %v938_v31 }
 0x1fa   : > { %2666 = vmatmul.mubr.msk.f32.gmra.mrb[26].mxu1 %vm494_vm2, %v939_v33  ;;  %v941_v39 = vmax.f32 %v915_v34, 0.0 }
 0x1fb   : > { %v940_v37 = vmax.f32 %v910_v36, 0.0  ;;  %v2645_v38 = vpop.f32.mrb[14].mxu1  ;;  %2695 = vmatmul.mubr.msk.f32.gmra.mrb[28].mxu0 %vm296_vm1, %v3022_v20 }
 0x1fc   : > { %v925_v40 = vadd.f32 %v2645_v38, %v2311_v46  ;;  %v919_v41 = vpop.f32.mrb[15].mxu1  ;;  %2697 = vmatprep.mubr.msk.f32.mxu0 %vm296_vm1, %v3025_v21 }
 0x1fd   : > { %v920_v42 = vadd.f32 %v2311_v46, %v919_v41  ;;  %2668 = vmatprep.mubr.msk.f32.mxu1 %vm494_vm2, %v940_v37  ;;  %v1288_v46 = vld [vmem:[%s3490_s3 + $0x48] sm:$0xff] }
 0x1fe   : > { %2669 = vmatmul.mubr.msk.f32.gmra.mrb[28].mxu1 %vm494_vm2, %v941_v39  ;;  %v943_v44 = vmax.f32 %v925_v40, 0.0  ;;  %2700 = vmatprep.subr.mxu0 %v1288_v46 }
 0x1ff   : > { %v942_v43 = vmax.f32 %v920_v42, 0.0  ;;  %2701 = vmatpush3.msra.mxu0 %v1288_v46 }
 0x200   : > { %2698 = vmatmul.mubr.msk.f32.gmra.mrb[30].mxu0 %vm296_vm1, %v3038_v22 }
 0x201   : > { %2671 = vmatprep.mubr.msk.f32.mxu1 %vm494_vm2, %v942_v43 }
 0x202   : > { %2672 = vmatmul.mubr.msk.f32.gmra.mrb[30].mxu1 %vm494_vm2, %v943_v44 }
 0x2b9   : > { %v2652_v9 = vpop.f32.mrb[16].mxu1 }
 0x2ba   : > { %v3170_v10 = vadd.f32 %v2652_v9, %v3167_v8  ;;  %v1065_v11 = vpop.f32.mrb[17].mxu1 }
 0x2bb   : > { %v3173_v12 = vadd.f32 %v3167_v8, %v1065_v11 }
 0x2bc   : > { %v1145_v13 = vmul.f32 0.5, %v3170_v10 }
 0x2bd   : > { %v1144_v14 = vmul.f32 0.5, %v3173_v12  ;;  %v2655_v15 = vpop.f32.mrb[18].mxu1 }
 0x2be   : > { %v3178_v16 = vadd.f32 %v2655_v15, %v3167_v8  ;;  %v1075_v17 = vpop.f32.mrb[19].mxu1  ;;  %v1162_v20 = vmul.f32 1.442695, %v1145_v13 }
 0x2bf   : > { %v1160_v18 = vmul.f32 1.442695, %v1144_v14  ;;  %v3181_v19 = vadd.f32 %v3167_v8, %v1075_v17 }
 0x2c0   : > { %v1147_v21 = vmul.f32 0.5, %v3178_v16 }
 0x2c1   : > { %2856 = vpow2.f32 %v1160_v18  ;;  %v1146_v22 = vmul.f32 0.5, %v3181_v19  ;;  %v2658_v48 = vpop.f32.mrb[20].mxu1 }
 0x2c2   : > { %v3186_v49 = vadd.f32 %v2658_v48, %v3167_v8  ;;  %v1085_v50 = vpop.f32.mrb[21].mxu1  ;;  %2858 = vpow2.f32 %v1162_v20  ;;  %v1166_v52 = vmul.f32 1.442695, %v1147_v21 }
 0x2c3   : > { %v1164_v51 = vmul.f32 1.442695, %v1146_v22  ;;  %v3189_v45 = vadd.f32 %v3167_v8, %v1085_v50 }
 0x2c4   : > { %v1149_v53 = vmul.f32 0.5, %v3186_v49 }
 0x2c5   : > { %2860 = vpow2.f32 %v1164_v51  ;;  %v1148_v54 = vmul.f32 0.5, %v3189_v45  ;;  %v2661_v55 = vpop.f32.mrb[22].mxu1 }
 0x2c6   : > { %v3194_v56 = vadd.f32 %v2661_v55, %v3167_v8  ;;  %v1095_v57 = vpop.f32.mrb[23].mxu1  ;;  %2862 = vpow2.f32 %v1166_v52  ;;  %v1170_v60 = vmul.f32 1.442695, %v1149_v53  ;;  %v1669_v55 = vld [vmem:[%s3490_s3 + $0x58] sm:$0xff] }
 0x2c7   : > { %v1168_v58 = vmul.f32 1.442695, %v1148_v54  ;;  %v3197_v59 = vadd.f32 %v3167_v8, %v1095_v57  ;;  %v1670_v57 = vld [vmem:[%s3490_s3 + $0x60] sm:$0xff] }
 0x2c8   : > { %v1151_v61 = vmul.f32 0.5, %v3194_v56 }
 0x2c9   : > { %2864 = vpow2.f32 %v1168_v58  ;;  %v1150_v62 = vmul.f32 0.5, %v3197_v59  ;;  %v2664_v63 = vpop.f32.mrb[24].mxu1  ;;  %v2802_v58 = vpack.c.bf16 %v1670_v57, %v1669_v55 }
 0x2ca   : > { %v3202_v0 = vadd.f32 %v2664_v63, %v3167_v8  ;;  %v1105_v1 = vpop.f32.mrb[25].mxu1  ;;  %2866 = vpow2.f32 %v1170_v60  ;;  %v1174_v5 = vmul.f32 1.442695, %v1151_v61  ;;  %v277_v60 = vld [vmem:[%s3275_s11] sm:$0xff]  ;;  %v279_v63 = vld [vmem:[%s3275_s11 + $0x10] sm:$0xff] }
 0x2cb   : > { %v2857_v2 = vpop.eup %2856  ;;  %v1172_v3 = vmul.f32 1.442695, %v1150_v62  ;;  %v3205_v4 = vadd.f32 %v3167_v8, %v1105_v1  ;;  %2803 = vmatprep.subr.bf16.mxu1 %v2802_v58  ;;  %v278_v1 = vld [vmem:[%s3275_s11 + $0x8] sm:$0xff] }
 0x2cc   : > { %v1153_v6 = vmul.f32 0.5, %v3202_v0  ;;  %1208 = vrot.lane.b32.xlu0 %v2857_v2, %s2896_s29  ;;  %v2859_v24 = vpop.eup %2858  ;;  %2805 = vmatpush3.bf16.msra.mxu1 %v2802_v58 }
 0x2cd   : > { %2868 = vpow2.f32 %v1172_v3  ;;  %v1152_v7 = vmul.f32 0.5, %v3205_v4  ;;  %v2667_v23 = vpop.f32.mrb[26].mxu1 }
 0x2ce   : > { %v3211_v25 = vadd.f32 %v2667_v23, %v3167_v8  ;;  %v1115_v26 = vpop.f32.mrb[27].mxu1  ;;  %2870 = vpow2.f32 %v1174_v5  ;;  %v1178_v30 = vmul.f32 1.442695, %v1153_v6  ;;  %v280_v23 = vld [vmem:[%s3275_s11 + $0x18] sm:$0xff] }
 0x2cf   : > { %v2861_v27 = vpop.eup %2860  ;;  %v1176_v28 = vmul.f32 1.442695, %v1152_v7  ;;  %v3214_v29 = vadd.f32 %v3167_v8, %v1115_v26 }
 0x2d0   : > { %v1155_v31 = vmul.f32 0.5, %v3211_v25  ;;  %1212 = vrot.lane.b32.xlu1 %v2861_v27, %s2896_s29  ;;  %1210 = vrot.lane.b32.xlu0 %v2859_v24, %s2896_s29  ;;  %v2863_v34 = vpop.eup %2862  ;;  %v281_v24 = vld [vmem:[%s3275_s11 + $0x20] sm:$0xff] }
 0x2d1   : > { %2872 = vpow2.f32 %v1176_v28  ;;  %v1154_v32 = vmul.f32 0.5, %v3214_v29  ;;  %v2670_v33 = vpop.f32.mrb[28].mxu1 }
 0x2d2   : > { %v3221_v35 = vadd.f32 %v2670_v33, %v3167_v8  ;;  %v1125_v36 = vpop.f32.mrb[29].mxu1  ;;  %2874 = vpow2.f32 %v1178_v30  ;;  %v1182_v40 = vmul.f32 1.442695, %v1155_v31  ;;  %v283_v33 = vld [vmem:[%s3275_s11 + $0x30] sm:$0xff] }
 0x2d3   : > { %v2865_v37 = vpop.eup %2864  ;;  %v1180_v38 = vmul.f32 1.442695, %v1154_v32  ;;  %v3224_v39 = vadd.f32 %v3167_v8, %v1125_v36  ;;  %v282_v32 = vld [vmem:[%s3275_s11 + $0x28] sm:$0xff] }
 0x2d4   : > { %v1157_v41 = vmul.f32 0.5, %v3221_v35  ;;  %1214 = vrot.lane.b32.xlu1 %v2863_v34, %s2896_s29  ;;  %1216 = vrot.lane.b32.xlu0 %v2865_v37, %s2896_s29  ;;  %v2867_v44 = vpop.eup %2866 }
 0x2d5   : > { %2876 = vpow2.f32 %v1180_v38  ;;  %v1156_v42 = vmul.f32 0.5, %v3224_v39  ;;  %v2673_v43 = vpop.f32.mrb[30].mxu1 }
 0x2d6   : > { %v3231_v47 = vadd.f32 %v2673_v43, %v3167_v8  ;;  %v1135_v46 = vpop.f32.mrb[31].mxu1  ;;  %2878 = vpow2.f32 %v1182_v40  ;;  %v1186_v14 = vmul.f32 1.442695, %v1157_v41  ;;  %v284_v40 = vld [vmem:[%s3275_s11 + $0x38] sm:$0xff]  ;;  %v285_v41 = vld [vmem:[%s3275_s11 + $0x40] sm:$0xff] }
 0x2d7   : > { %v2869_v9 = vpop.eup %2868  ;;  %v1184_v11 = vmul.f32 1.442695, %v1156_v42  ;;  %v3234_v13 = vadd.f32 %v3167_v8, %v1135_v46 }
 0x2d8   : > { %1218 = vrot.lane.b32.xlu1 %v2867_v44, %s2896_s29  ;;  %1220 = vrot.lane.b32.xlu0 %v2869_v9, %s2896_s29  ;;  %v1159_v15 = vmul.f32 0.5, %v3231_v47  ;;  %v2871_v18 = vpop.eup %2870  ;;  %v286_v9 = vld [vmem:[%s3275_s11 + $0x48] sm:$0xff] }
 0x2d9   : > { %2880 = vpow2.f32 %v1184_v11  ;;  %v1158_v17 = vmul.f32 0.5, %v3234_v13  ;;  %v287_v11 = vld [vmem:[%s3275_s11 + $0x50] sm:$0xff] }
 0x2da   : > { %2882 = vpow2.f32 %v1186_v14  ;;  %v1190_v8 = vmul.f32 1.442695, %v1159_v15 }
 0x2db   : > { %v2873_v20 = vpop.eup %2872  ;;  %v1188_v21 = vmul.f32 1.442695, %v1158_v17 }
 0x2dc   : > { %1222 = vrot.lane.b32.xlu1 %v2871_v18, %s2896_s29  ;;  %1224 = vrot.lane.b32.xlu0 %v2873_v20, %s2896_s29  ;;  %v2875_v22 = vpop.eup %2874  ;;  %v288_v20 = vld [vmem:[%s3275_s11 + $0x58] sm:$0xff] }
 0x2dd   : > { %2884 = vpow2.f32 %v1188_v21  ;;  %v289_v21 = vld [vmem:[%s3275_s11 + $0x60] sm:$0xff] }
 0x2de   : > { %2886 = vpow2.f32 %v1190_v8 }
 0x2df   : > { %v2877_v48 = vpop.eup %2876 }
 0x2e0   : > { %1226 = vrot.lane.b32.xlu1 %v2875_v22, %s2896_s29  ;;  %1228 = vrot.lane.b32.xlu0 %v2877_v48, %s2896_s29  ;;  %v2879_v50 = vpop.eup %2878 }
 0x2e3   : > { %v2881_v51 = vpop.eup %2880 }
 0x2e4   : > { %1230 = vrot.lane.b32.xlu1 %v2879_v50, %s2896_s29  ;;  %1232 = vrot.lane.b32.xlu0 %v2881_v51, %s2896_s29  ;;  %v2883_v52 = vpop.eup %2882  ;;  %v290_v51 = vld [vmem:[%s3275_s11 + $0x68] sm:$0xff] }
 0x2e7   : > { %v2885_v53 = vpop.eup %2884 }
 0x2e8   : > { %1234 = vrot.lane.b32.xlu1 %v2883_v52, %s2896_s29  ;;  %1236 = vrot.lane.b32.xlu0 %v2885_v53, %s2896_s29  ;;  %v2887_v54 = vpop.eup %2886  ;;  %v291_v52 = vld [vmem:[%s3275_s11 + $0x70] sm:$0xff] }
 0x2ec   : > { %1238 = vrot.lane.b32.xlu1 %v2887_v54, %s2896_s29  ;;  %2119 = vrot.lane.b32.xlu0 %v3173_v12, %s2897_s30 }
 0x2f0   : > { %2121 = vrot.lane.b32.xlu1 %v3170_v10, %s2897_s30  ;;  %2123 = vrot.lane.b32.xlu0 %v3181_v19, %s2897_s30 }
 0x2f4   : > { %2125 = vrot.lane.b32.xlu1 %v3178_v16, %s2897_s30  ;;  %2127 = vrot.lane.b32.xlu0 %v3189_v45, %s2897_s30 }
 0x2f8   : > { %2129 = vrot.lane.b32.xlu1 %v3186_v49, %s2897_s30  ;;  %2131 = vrot.lane.b32.xlu0 %v3197_v59, %s2897_s30 }
 0x2fc   : > { %2133 = vrot.lane.b32.xlu1 %v3194_v56, %s2897_s30  ;;  %2135 = vrot.lane.b32.xlu0 %v3205_v4, %s2897_s30 }
 0x300   : > { %2137 = vrot.lane.b32.xlu1 %v3202_v0, %s2897_s30  ;;  %2139 = vrot.lane.b32.xlu0 %v3214_v29, %s2897_s30 }
 0x304   : > { %2141 = vrot.lane.b32.xlu1 %v3211_v25, %s2897_s30  ;;  %2143 = vrot.lane.b32.xlu0 %v3224_v39, %s2897_s30 }
 0x308   : > { %2145 = vrot.lane.b32.xlu1 %v3221_v35, %s2897_s30  ;;  %2147 = vrot.lane.b32.xlu0 %v3234_v13, %s2897_s30 }
 0x30c   : > { %2149 = vrot.lane.b32.xlu1 %v3231_v47, %s2897_s30  ;;  %s3402_s30 = scalar_lea.vmem %s3491_s4, %s2948_s28 }
 0x33e   : > { %v1209_v61 = vpop.permute.xlu0 %1208 }
 0x33f   : > { %v1256_v62 = vmul.f32 %v1209_v61, %v277_v60 }
 0x341   : > { %v1272_v2 = vadd.f32 %v1256_v62, %v3173_v12 }
 0x342   : > { %v1213_v3 = vpop.permute.xlu1 %1212  ;;  %v1211_v5 = vpop.permute.xlu0 %1210 }
 0x343   : > { %v1258_v6 = vmul.f32 %v1213_v3, %v279_v63  ;;  %v1257_v7 = vmul.f32 %v1211_v5, %v278_v1  ;;  %2702 = vmatprep.mubr.msk.f32.mxu0 %vm1438_vm4, %v1272_v2 }
 0x345   : > { %v1274_v26 = vadd.f32 %v1258_v6, %v3181_v19  ;;  %v1273_v27 = vadd.f32 %v1257_v7, %v3170_v10  ;;  %v1887_v6 = vld [vmem:[%s3490_s3 + $0x78] sm:$0xff]  ;;  %v1888_v7 = vld [vmem:[%s3490_s3 + $0x80] sm:$0xff] }
 0x346   : > { %v1215_v28 = vpop.permute.xlu1 %1214  ;;  %v1217_v30 = vpop.permute.xlu0 %1216 }
 0x347   : > { %v1259_v31 = vmul.f32 %v1215_v28, %v280_v23  ;;  %v1260_v12 = vmul.f32 %v1217_v30, %v281_v24  ;;  %2703 = vmatmul.mubr.msk.f32.vlgmr.msra.gmra.mrb[16].mxu0 %vm1438_vm4, %v1273_v27  ;;  %v2810_v30 = vpack.c.bf16 %v1888_v7, %v1887_v6 }
 0x348   : > { %2705 = vmatprep.mubr.msk.f32.mxu0 %vm1438_vm4, %v1274_v26 }
 0x349   : > { %v1275_v34 = vadd.f32 %v1259_v31, %v3178_v16  ;;  %v1276_v36 = vadd.f32 %v1260_v12, %v3189_v45 }
 0x34a   : > { %v1219_v37 = vpop.permute.xlu1 %1218  ;;  %v1221_v19 = vpop.permute.xlu0 %1220 }
 0x34b   : > { %v1261_v10 = vmul.f32 %v1219_v37, %v282_v32  ;;  %v1262_v38 = vmul.f32 %v1221_v19, %v283_v33  ;;  %2706 = vmatmul.mubr.msk.f32.gmra.mrb[18].mxu0 %vm1438_vm4, %v1275_v34 }
 0x34c   : > { %2708 = vmatprep.mubr.msk.f32.mxu0 %vm1438_vm4, %v1276_v36 }
 0x34d   : > { %v1277_v42 = vadd.f32 %v1261_v10, %v3186_v49  ;;  %v1278_v43 = vadd.f32 %v1262_v38, %v3197_v59 }
 0x34e   : > { %v1223_v44 = vpop.permute.xlu1 %1222  ;;  %v1225_v16 = vpop.permute.xlu0 %1224 }
 0x34f   : > { %v1263_v45 = vmul.f32 %v1223_v44, %v284_v40  ;;  %v1264_v46 = vmul.f32 %v1225_v16, %v285_v41  ;;  %2709 = vmatmul.mubr.msk.f32.gmra.mrb[20].mxu0 %vm1438_vm4, %v1277_v42 }
 0x350   : > { %2711 = vmatprep.mubr.msk.f32.mxu0 %vm1438_vm4, %v1278_v43 }
 0x351   : > { %v1279_v14 = vadd.f32 %v1263_v45, %v3194_v56  ;;  %v1280_v15 = vadd.f32 %v1264_v46, %v3205_v4 }
 0x352   : > { %v1227_v17 = vpop.permute.xlu1 %1226  ;;  %v1229_v49 = vpop.permute.xlu0 %1228 }
 0x353   : > { %v1265_v59 = vmul.f32 %v1227_v17, %v286_v9  ;;  %v1266_v18 = vmul.f32 %v1229_v49, %v287_v11  ;;  %2712 = vmatmul.mubr.msk.f32.gmra.mrb[22].mxu0 %vm1438_vm4, %v1279_v14 }
 0x354   : > { %2714 = vmatprep.mubr.msk.f32.mxu0 %vm1438_vm4, %v1280_v15 }
 0x355   : > { %v1281_v8 = vadd.f32 %v1265_v59, %v3202_v0  ;;  %v1282_v22 = vadd.f32 %v1266_v18, %v3214_v29  ;;  %v292_v29 = vld [vmem:[%s3275_s11 + $0x78] sm:$0xff] }
 0x356   : > { %v1231_v48 = vpop.permute.xlu1 %1230  ;;  %v1233_v56 = vpop.permute.xlu0 %1232 }
 0x357   : > { %v1267_v4 = vmul.f32 %v1231_v48, %v288_v20  ;;  %v1268_v50 = vmul.f32 %v1233_v56, %v289_v21  ;;  %2715 = vmatmul.mubr.msk.f32.gmra.mrb[24].mxu0 %vm1438_vm4, %v1281_v8 }
 0x358   : > { %2717 = vmatprep.mubr.msk.f32.mxu0 %vm1438_vm4, %v1282_v22 }
 0x359   : > { %v1283_v53 = vadd.f32 %v1267_v4, %v3211_v25  ;;  %v1284_v54 = vadd.f32 %v1268_v50, %v3224_v39  ;;  %v1885_v39 = vld [vmem:[%s3490_s3 + $0x68] sm:$0xff] }
 0x35a   : > { %v1235_v55 = vpop.permute.xlu1 %1234  ;;  %v1237_v57 = vpop.permute.xlu0 %1236 }
 0x35b   : > { %v1269_v0 = vmul.f32 %v1235_v55, %v290_v51  ;;  %v1270_v58 = vmul.f32 %v1237_v57, %v291_v52  ;;  %2718 = vmatmul.mubr.msk.f32.gmra.mrb[26].mxu0 %vm1438_vm4, %v1283_v53  ;;  %v2379_v57 = vld [vmem:[%s3490_s3 + $0xa8] ss:$0 sm:$0xff] }
 0x35c   : > { %2720 = vmatprep.mubr.msk.f32.mxu0 %vm1438_vm4, %v1284_v54 }
 0x35d   : > { %v1285_v60 = vadd.f32 %v1269_v0, %v3221_v35  ;;  %v1286_v61 = vadd.f32 %v1270_v58, %v3234_v13  ;;  %v1886_v35 = vld [vmem:[%s3490_s3 + $0x70] sm:$0xff]  ;;  %v3334_v13 = vld [vmem:[%s3490_s3 + $0xa0] ss:$0 sm:$0xff] }
 0x35e   : > { %v1239_v62 = vpop.permute.xlu1 %1238  ;;  %v2806_v1 = vpack.c.bf16 %v1886_v35, %v1885_v39 }
 0x35f   : > { %v1271_v63 = vmul.f32 %v1239_v62, %v292_v29  ;;  %2721 = vmatmul.mubr.msk.f32.gmra.mrb[28].mxu0 %vm1438_vm4, %v1285_v60 }
 0x360   : > { %2723 = vmatprep.mubr.msk.f32.mxu0 %vm1438_vm4, %v1286_v61  ;;  %2807 = vmatprep.subr.bf16.mxu1 %v2806_v1 }
 0x361   : > { %v1287_v25 = vadd.f32 %v1271_v63, %v3231_v47 }
 0x363   : > { %2724 = vmatmul.mubr.msk.f32.gmra.mrb[30].mxu0 %vm1438_vm4, %v1287_v25 }
 0x41a   : > { %v2704_v2 = vpop.f32.mrb[16].mxu0 }
 0x41b   : > { %v1638_v47 = vadd.f32 %v2704_v2, %v3334_v13  ;;  %v1553_v3 = vpop.f32.mrb[17].mxu0 }
 0x41c   : > { %v1637_v5 = vadd.f32 %v3334_v13, %v1553_v3 }
 0x41d   : > { %v1654_v26 = vmax.f32 %v1638_v47, 0.0 }
 0x41e   : > { %v1653_v23 = vmax.f32 %v1637_v5, 0.0  ;;  %v2707_v24 = vpop.f32.mrb[18].mxu0 }
 0x41f   : > { %v1640_v27 = vadd.f32 %v2707_v24, %v3334_v13  ;;  %v1563_v28 = vpop.f32.mrb[19].mxu0 }
 0x420   : > { %v1639_v31 = vadd.f32 %v3334_v13, %v1563_v28  ;;  %2730 = vmatprep.mubr.msk.f32.mxu1 %vm494_vm2, %v1653_v23 }
 0x421   : > { %2731 = vmatmul.mubr.msk.f32.vlgmr.msra.gmra.mrb[32].mxu1 %vm494_vm2, %v1654_v26  ;;  %v1656_v33 = vmax.f32 %v1640_v27, 0.0 }
 0x422   : > { %v1655_v12 = vmax.f32 %v1639_v31, 0.0  ;;  %v2710_v32 = vpop.f32.mrb[20].mxu0  ;;  %2809 = vmatpush3.bf16.msra.mxu1 %v2806_v1 }
 0x423   : > { %v1642_v34 = vadd.f32 %v2710_v32, %v3334_v13  ;;  %v1573_v36 = vpop.f32.mrb[21].mxu0  ;;  %2811 = vmatprep.subr.bf16.mxu1 %v2810_v30 }
 0x424   : > { %v1641_v37 = vadd.f32 %v3334_v13, %v1573_v36  ;;  %2733 = vmatprep.mubr.msk.f32.mxu1 %vm494_vm2, %v1655_v12 }
 0x425   : > { %2734 = vmatmul.mubr.msk.f32.gmra.mrb[34].mxu1 %vm494_vm2, %v1656_v33  ;;  %v1658_v38 = vmax.f32 %v1642_v34, 0.0 }
 0x426   : > { %v1657_v19 = vmax.f32 %v1641_v37, 0.0  ;;  %v2713_v10 = vpop.f32.mrb[22].mxu0  ;;  %2813 = vmatpush3.bf16.msra.mxu1 %v2810_v30 }
 0x427   : > { %v1644_v40 = vadd.f32 %v2713_v10, %v3334_v13  ;;  %v1583_v41 = vpop.f32.mrb[23].mxu0 }
 0x428   : > { %v1643_v42 = vadd.f32 %v3334_v13, %v1583_v41  ;;  %2736 = vmatprep.mubr.msk.f32.mxu1 %vm494_vm2, %v1657_v19 }
 0x429   : > { %2737 = vmatmul.mubr.msk.f32.gmra.mrb[36].mxu1 %vm494_vm2, %v1658_v38  ;;  %v1660_v16 = vmax.f32 %v1644_v40, 0.0 }
 0x42a   : > { %v1659_v43 = vmax.f32 %v1643_v42, 0.0  ;;  %v2716_v44 = vpop.f32.mrb[24].mxu0 }
 0x42b   : > { %v1646_v45 = vadd.f32 %v2716_v44, %v3334_v13  ;;  %v1593_v46 = vpop.f32.mrb[25].mxu0 }
 0x42c   : > { %v1645_v9 = vadd.f32 %v3334_v13, %v1593_v46  ;;  %2739 = vmatprep.mubr.msk.f32.mxu1 %vm494_vm2, %v1659_v43 }
 0x42d   : > { %2740 = vmatmul.mubr.msk.f32.gmra.mrb[38].mxu1 %vm494_vm2, %v1660_v16  ;;  %v1662_v15 = vmax.f32 %v1646_v45, 0.0 }
 0x42e   : > { %v1661_v11 = vmax.f32 %v1645_v9, 0.0  ;;  %v2719_v14 = vpop.f32.mrb[26].mxu0 }
 0x42f   : > { %v1648_v17 = vadd.f32 %v2719_v14, %v3334_v13  ;;  %v1603_v49 = vpop.f32.mrb[27].mxu0 }
 0x430   : > { %v1647_v59 = vadd.f32 %v3334_v13, %v1603_v49  ;;  %2742 = vmatprep.mubr.msk.f32.mxu1 %vm494_vm2, %v1661_v11 }
 0x431   : > { %2743 = vmatmul.mubr.msk.f32.gmra.mrb[40].mxu1 %vm494_vm2, %v1662_v15  ;;  %v1664_v21 = vmax.f32 %v1648_v17, 0.0 }
 0x432   : > { %v1663_v18 = vmax.f32 %v1647_v59, 0.0  ;;  %v2722_v20 = vpop.f32.mrb[28].mxu0  ;;  %v2122_v59 = vpop.permute.xlu1 %2121 }
 0x433   : > { %v1650_v8 = vadd.f32 %v2722_v20, %v3334_v13  ;;  %v1613_v22 = vpop.f32.mrb[29].mxu0 }
 0x434   : > { %v1649_v48 = vadd.f32 %v3334_v13, %v1613_v22  ;;  %2745 = vmatprep.mubr.msk.f32.mxu1 %vm494_vm2, %v1663_v18  ;;  %v2120_v18 = vpop.permute.xlu0 %2119 }
 0x435   : > { %2746 = vmatmul.mubr.msk.f32.gmra.mrb[42].mxu1 %vm494_vm2, %v1664_v21  ;;  %v1666_v50 = vmax.f32 %v1650_v8, 0.0  ;;  %v3396_v8 = vld [vmem:[%s3490_s3 + $0xb0] ss:$0 sm:$0xff] }
 0x436   : > { %v1665_v56 = vmax.f32 %v1649_v48, 0.0  ;;  %v2725_v4 = vpop.f32.mrb[30].mxu0  ;;  %v2126_v20 = vpop.permute.xlu1 %2125 }
 0x437   : > { %v1652_v51 = vadd.f32 %v2725_v4, %v3334_v13  ;;  %v1623_v52 = vpop.f32.mrb[31].mxu0 }
 0x438   : > { %v1651_v53 = vadd.f32 %v3334_v13, %v1623_v52  ;;  %2748 = vmatprep.mubr.msk.f32.mxu1 %vm494_vm2, %v1665_v56  ;;  %v2124_v21 = vpop.permute.xlu0 %2123 }
 0x439   : > { %2749 = vmatmul.mubr.msk.f32.gmra.mrb[44].mxu1 %vm494_vm2, %v1666_v50  ;;  %v1668_v55 = vmax.f32 %v1652_v51, 0.0 }
 0x43a   : > { %v1667_v54 = vmax.f32 %v1651_v53, 0.0  ;;  %v2130_v48 = vpop.permute.xlu1 %2129 }
 0x43c   : > { %2751 = vmatprep.mubr.msk.f32.mxu1 %vm494_vm2, %v1667_v54  ;;  %v2128_v50 = vpop.permute.xlu0 %2127 }
 0x43d   : > { %2752 = vmatmul.mubr.msk.f32.gmra.mrb[46].mxu1 %vm494_vm2, %v1668_v55 }
 0x4f4   : > { %v2732_v0 = vpop.f32.mrb[32].mxu1 }
 0x4f5   : > { %v1796_v58 = vadd.f32 %v2732_v0, %v2379_v57  ;;  %v1790_v29 = vpop.f32.mrb[33].mxu1  ;;  %v2132_v0 = vpop.permute.xlu0 %2131 }
 0x4f6   : > { %v1791_v60 = vadd.f32 %v2379_v57, %v1790_v29 }
 0x4f7   : > { %v1870_v63 = vmax.f32 %v1796_v58, 0.0 }
 0x4f8   : > { %v1869_v61 = vmax.f32 %v1791_v60, 0.0  ;;  %v2735_v62 = vpop.f32.mrb[34].mxu1 }
 0x4f9   : > { %v1806_v25 = vadd.f32 %v2735_v62, %v2379_v57  ;;  %v1800_v39 = vpop.f32.mrb[35].mxu1 }
 0x4fa   : > { %v1801_v35 = vadd.f32 %v2379_v57, %v1800_v39  ;;  %2762 = vmatprep.mubr.msk.f32.mxu1 %vm734_vm3, %v1869_v61 }
 0x4fb   : > { %2763 = vmatmul.mubr.msk.f32.vlgmr.msra.gmra.mrb[48].mxu1 %vm734_vm3, %v1870_v63  ;;  %v1872_v2 = vmax.f32 %v1806_v25, 0.0 }
 0x4fc   : > { %v1871_v1 = vmax.f32 %v1801_v35, 0.0  ;;  %v2738_v13 = vpop.f32.mrb[36].mxu1  ;;  %v2136_v35 = vpop.permute.xlu0 %2135 }
 0x4fd   : > { %v1816_v47 = vadd.f32 %v2738_v13, %v2379_v57  ;;  %v1810_v3 = vpop.f32.mrb[37].mxu1 }
 0x4fe   : > { %v1811_v5 = vadd.f32 %v2379_v57, %v1810_v3  ;;  %2765 = vmatprep.mubr.msk.f32.mxu1 %vm734_vm3, %v1871_v1 }
 0x4ff   : > { %2766 = vmatmul.mubr.msk.f32.gmra.mrb[50].mxu1 %vm734_vm3, %v1872_v2  ;;  %v1874_v23 = vmax.f32 %v1816_v47, 0.0 }
 0x500   : > { %v1873_v6 = vmax.f32 %v1811_v5, 0.0  ;;  %v2741_v7 = vpop.f32.mrb[38].mxu1 }
 0x501   : > { %v1826_v24 = vadd.f32 %v2741_v7, %v2379_v57  ;;  %v1820_v26 = vpop.f32.mrb[39].mxu1 }
 0x502   : > { %v1821_v27 = vadd.f32 %v2379_v57, %v1820_v26  ;;  %2768 = vmatprep.mubr.msk.f32.mxu1 %vm734_vm3, %v1873_v6  ;;  %v2140_v6 = vpop.permute.xlu0 %2139 }
 0x503   : > { %2769 = vmatmul.mubr.msk.f32.gmra.mrb[52].mxu1 %vm734_vm3, %v1874_v23  ;;  %v1876_v31 = vmax.f32 %v1826_v24, 0.0 }
 0x504   : > { %v1875_v28 = vmax.f32 %v1821_v27, 0.0  ;;  %v2744_v30 = vpop.f32.mrb[40].mxu1 }
 0x505   : > { %v1836_v12 = vadd.f32 %v2744_v30, %v2379_v57  ;;  %v1830_v32 = vpop.f32.mrb[41].mxu1 }
 0x506   : > { %v1831_v33 = vadd.f32 %v2379_v57, %v1830_v32  ;;  %2771 = vmatprep.mubr.msk.f32.mxu1 %vm734_vm3, %v1875_v28 }
 0x507   : > { %2772 = vmatmul.mubr.msk.f32.gmra.mrb[54].mxu1 %vm734_vm3, %v1876_v31  ;;  %v1878_v37 = vmax.f32 %v1836_v12, 0.0  ;;  %v2144_v12 = vpop.permute.xlu0 %2143 }
 0x508   : > { %v1877_v34 = vmax.f32 %v1831_v33, 0.0  ;;  %v2747_v36 = vpop.f32.mrb[42].mxu1 }
 0x509   : > { %v1846_v19 = vadd.f32 %v2747_v36, %v2379_v57  ;;  %v1840_v10 = vpop.f32.mrb[43].mxu1 }
 0x50a   : > { %v1841_v38 = vadd.f32 %v2379_v57, %v1840_v10  ;;  %2774 = vmatprep.mubr.msk.f32.mxu1 %vm734_vm3, %v1877_v34 }
 0x50b   : > { %2775 = vmatmul.mubr.msk.f32.gmra.mrb[56].mxu1 %vm734_vm3, %v1878_v37  ;;  %v1880_v42 = vmax.f32 %v1846_v19, 0.0  ;;  %v2148_v10 = vpop.permute.xlu0 %2147 }
 0x50c   : > { %v1879_v40 = vmax.f32 %v1841_v38, 0.0  ;;  %v2750_v41 = vpop.f32.mrb[44].mxu1 }
 0x50d   : > { %v1856_v43 = vadd.f32 %v2750_v41, %v2379_v57  ;;  %v1850_v44 = vpop.f32.mrb[45].mxu1 }
 0x50e   : > { %v1851_v16 = vadd.f32 %v2379_v57, %v1850_v44  ;;  %2777 = vmatprep.mubr.msk.f32.mxu1 %vm734_vm3, %v1879_v40 }
 0x50f   : > { %2778 = vmatmul.mubr.msk.f32.gmra.mrb[58].mxu1 %vm734_vm3, %v1880_v42  ;;  %v1882_v9 = vmax.f32 %v1856_v43, 0.0 }
 0x510   : > { %v1881_v45 = vmax.f32 %v1851_v16, 0.0  ;;  %v2753_v46 = vpop.f32.mrb[46].mxu1 }
 0x511   : > { %v1866_v11 = vadd.f32 %v2753_v46, %v2379_v57  ;;  %v1860_v14 = vpop.f32.mrb[47].mxu1 }
 0x512   : > { %v1861_v15 = vadd.f32 %v2379_v57, %v1860_v14  ;;  %2780 = vmatprep.mubr.msk.f32.mxu1 %vm734_vm3, %v1881_v45  ;;  %v2134_v57 = vpop.permute.xlu1 %2133 }
 0x513   : > { %2781 = vmatmul.mubr.msk.f32.gmra.mrb[60].mxu1 %vm734_vm3, %v1882_v9  ;;  %v1884_v49 = vmax.f32 %v1866_v11, 0.0 }
 0x514   : > { %v1883_v17 = vmax.f32 %v1861_v15, 0.0 }
 0x516   : > { %2783 = vmatprep.mubr.msk.f32.mxu1 %vm734_vm3, %v1883_v17  ;;  %v2138_v63 = vpop.permute.xlu1 %2137 }
 0x517   : > { %2784 = vmatmul.mubr.msk.f32.gmra.mrb[62].mxu1 %vm734_vm3, %v1884_v49 }
 0x51a   : > { %v2142_v5 = vpop.permute.xlu1 %2141 }
 0x51e   : > { %v2146_v28 = vpop.permute.xlu1 %2145 }
 0x522   : > { %v2150_v19 = vpop.permute.xlu1 %2149 }
 0x5ce   : > { %v2764_v22 = vpop.f32.mrb[48].mxu1 }
 0x5cf   : > { %v2014_v56 = vadd.f32 %v2764_v22, %v3396_v8  ;;  %v2008_v4 = vpop.f32.mrb[49].mxu1 }
 0x5d0   : > { %v2009_v51 = vadd.f32 %v3396_v8, %v2008_v4 }
 0x5d1   : > { %2088 = vst.msk [vmem:[%s3402_s30 + $0x8] sm:$0xff] %vm494_vm2, %v2014_v56 }
 0x5d2   : > { %2169 = vst.msk [vmem:[%s3402_s30 + $0x8] sm:$0xff] %vm2167_vm5, %v2122_v59  ;;  %v2767_v52 = vpop.f32.mrb[50].mxu1 }
 0x5d3   : > { %2087 = vst.msk [vmem:[%s3402_s30] sm:$0xff] %vm494_vm2, %v2009_v51  ;;  %v2024_v53 = vadd.f32 %v2767_v52, %v3396_v8  ;;  %v2018_v54 = vpop.f32.mrb[51].mxu1 }
 0x5d4   : > { %2168 = vst.msk [vmem:[%s3402_s30] sm:$0xff] %vm2167_vm5, %v2120_v18  ;;  %v2019_v55 = vadd.f32 %v3396_v8, %v2018_v54 }
 0x5d5   : > { %2090 = vst.msk [vmem:[%s3402_s30 + $0x18] sm:$0xff] %vm494_vm2, %v2024_v53 }
 0x5d6   : > { %2171 = vst.msk [vmem:[%s3402_s30 + $0x18] sm:$0xff] %vm2167_vm5, %v2126_v20  ;;  %v2770_v58 = vpop.f32.mrb[52].mxu1 }
 0x5d7   : > { %2089 = vst.msk [vmem:[%s3402_s30 + $0x10] sm:$0xff] %vm494_vm2, %v2019_v55  ;;  %v2034_v29 = vadd.f32 %v2770_v58, %v3396_v8  ;;  %v2028_v60 = vpop.f32.mrb[53].mxu1 }
 0x5d8   : > { %2170 = vst.msk [vmem:[%s3402_s30 + $0x10] sm:$0xff] %vm2167_vm5, %v2124_v21  ;;  %v2029_v61 = vadd.f32 %v3396_v8, %v2028_v60 }
 0x5d9   : > { %2092 = vst.msk [vmem:[%s3402_s30 + $0x28] sm:$0xff] %vm494_vm2, %v2034_v29 }
 0x5da   : > { %2173 = vst.msk [vmem:[%s3402_s30 + $0x28] sm:$0xff] %vm2167_vm5, %v2130_v48  ;;  %v2773_v62 = vpop.f32.mrb[54].mxu1 }
 0x5db   : > { %2091 = vst.msk [vmem:[%s3402_s30 + $0x20] sm:$0xff] %vm494_vm2, %v2029_v61  ;;  %v2044_v25 = vadd.f32 %v2773_v62, %v3396_v8  ;;  %v2038_v39 = vpop.f32.mrb[55].mxu1 }
 0x5dc   : > { %2172 = vst.msk [vmem:[%s3402_s30 + $0x20] sm:$0xff] %vm2167_vm5, %v2128_v50  ;;  %v2039_v1 = vadd.f32 %v3396_v8, %v2038_v39 }
 0x5dd   : > { %2094 = vst.msk [vmem:[%s3402_s30 + $0x38] sm:$0xff] %vm494_vm2, %v2044_v25 }
 0x5de   : > { %2175 = vst.msk [vmem:[%s3402_s30 + $0x38] sm:$0xff] %vm2167_vm5, %v2134_v57  ;;  %v2776_v13 = vpop.f32.mrb[56].mxu1 }
 0x5df   : > { %2093 = vst.msk [vmem:[%s3402_s30 + $0x30] sm:$0xff] %vm494_vm2, %v2039_v1  ;;  %v2054_v2 = vadd.f32 %v2776_v13, %v3396_v8  ;;  %v2048_v47 = vpop.f32.mrb[57].mxu1 }
 0x5e0   : > { %2174 = vst.msk [vmem:[%s3402_s30 + $0x30] sm:$0xff] %vm2167_vm5, %v2132_v0  ;;  %v2049_v3 = vadd.f32 %v3396_v8, %v2048_v47 }
 0x5e1   : > { %2096 = vst.msk [vmem:[%s3402_s30 + $0x48] sm:$0xff] %vm494_vm2, %v2054_v2 }
 0x5e2   : > { %2177 = vst.msk [vmem:[%s3402_s30 + $0x48] sm:$0xff] %vm2167_vm5, %v2138_v63  ;;  %v2779_v7 = vpop.f32.mrb[58].mxu1 }
 0x5e3   : > { %2095 = vst.msk [vmem:[%s3402_s30 + $0x40] sm:$0xff] %vm494_vm2, %v2049_v3  ;;  %v2064_v23 = vadd.f32 %v2779_v7, %v3396_v8  ;;  %v2058_v24 = vpop.f32.mrb[59].mxu1 }
 0x5e4   : > { %2176 = vst.msk [vmem:[%s3402_s30 + $0x40] sm:$0xff] %vm2167_vm5, %v2136_v35  ;;  %v2059_v26 = vadd.f32 %v3396_v8, %v2058_v24 }
 0x5e5   : > { %2098 = vst.msk [vmem:[%s3402_s30 + $0x58] sm:$0xff] %vm494_vm2, %v2064_v23 }
 0x5e6   : > { %2179 = vst.msk [vmem:[%s3402_s30 + $0x58] sm:$0xff] %vm2167_vm5, %v2142_v5  ;;  %v2782_v27 = vpop.f32.mrb[60].mxu1 }
 0x5e7   : > { %2097 = vst.msk [vmem:[%s3402_s30 + $0x50] sm:$0xff] %vm494_vm2, %v2059_v26  ;;  %v2074_v30 = vadd.f32 %v2782_v27, %v3396_v8  ;;  %v2068_v31 = vpop.f32.mrb[61].mxu1 }
 0x5e8   : > { %2178 = vst.msk [vmem:[%s3402_s30 + $0x50] sm:$0xff] %vm2167_vm5, %v2140_v6  ;;  %v2069_v32 = vadd.f32 %v3396_v8, %v2068_v31 }
 0x5e9   : > { %2100 = vst.msk [vmem:[%s3402_s30 + $0x68] sm:$0xff] %vm494_vm2, %v2074_v30 }
 0x5ea   : > { %2181 = vst.msk [vmem:[%s3402_s30 + $0x68] sm:$0xff] %vm2167_vm5, %v2146_v28  ;;  %v2785_v33 = vpop.f32.mrb[62].mxu1 }
 0x5eb   : > { %2099 = vst.msk [vmem:[%s3402_s30 + $0x60] sm:$0xff] %vm494_vm2, %v2069_v32  ;;  %v2084_v34 = vadd.f32 %v2785_v33, %v3396_v8  ;;  %v2078_v36 = vpop.f32.mrb[63].mxu1 }
 0x5ec   : > { %2180 = vst.msk [vmem:[%s3402_s30 + $0x60] sm:$0xff] %vm2167_vm5, %v2144_v12  ;;  %v2079_v37 = vadd.f32 %v3396_v8, %v2078_v36 }
 0x5ed   : > { %2102 = vst.msk [vmem:[%s3402_s30 + $0x78] sm:$0xff] %vm494_vm2, %v2084_v34 }
 0x5ee   : > { %2183 = vst.msk [vmem:[%s3402_s30 + $0x78] sm:$0xff] %vm2167_vm5, %v2150_v19 }
 0x5ef   : > { %2101 = vst.msk [vmem:[%s3402_s30 + $0x70] sm:$0xff] %vm494_vm2, %v2079_v37 }
 0x5f0   : > { %2182 = vst.msk [vmem:[%s3402_s30 + $0x70] sm:$0xff] %vm2167_vm5, %v2148_v10 }
 0x5f1 PF: > { %s14_s15 = sadd.s32 1, %s2894_s15  }
 0x5f2   : > { %p11_p4 = scmp.ge.s32.totalorder %s14_s15, 4  }
 0x5f4   :  { %13 = sbr.rel (!%p11_p4) target bundleno = 1 (0x1), region = 72 }

</bundles_post_ra>
